<compile_context>
chip_gen: v5e
topology: v5e:2x2
jax: 0.10.0
libtpu: 0.0.40
codegen_flags: <defaults>
</compile_context>

<pallas_src>
from functools import partial

import jax
import jax.numpy as jnp
from jax.experimental import pallas as pl
from jax.experimental.pallas import tpu as pltpu

LANE = 128
SUBLANE = 8


def _round_up(x, m):
    return ((x + m - 1) // m) * m


def _choose_tile_b(B):
    """Bucketed static batch tiles (avoids a recompile for every distinct B).
    Capped at 512 so B > 512 gives >= 2 grid steps -> the 'parallel' batch axis
    can split across both TensorCores on v7x."""
    for t in (8, 32, 128, 256, 512):
        if B <= t:
            return t
    return 512


# ---------------------------------------------------------------------------
# Kernel: one (TILE_B, S) row tile through the whole 3-layer MLP.
#   x_ref  : (TILE_B, S)   f32
#   w1_ref : (S,  Hp)      bf16 (fast) / f32 (exact)   pre-transposed, padded
#   w2_ref : (Hp, Hp)      bf16 / f32
#   w3_ref : (Hp, Op)      bf16 / f32
#   b1..b3 : (1, Hp/Op)    f32
#   o_ref  : (TILE_B, Op)  f32   (real outputs live in lanes [:O])
# ---------------------------------------------------------------------------
def ffnn_kernel(x_ref, w1_ref, w2_ref, w3_ref, b1_ref, b2_ref, b3_ref, o_ref):
    cdt = w1_ref.dtype   # MXU input dtype: bf16 in fast mode, f32 in exact mode

    h = jnp.dot(x_ref[...].astype(cdt), w1_ref[...],
                preferred_element_type=jnp.float32) + b1_ref[...]
    h = jnp.maximum(h, 0.0)                                            # ReLU (f32)

    h = jnp.dot(h.astype(cdt), w2_ref[...],
                preferred_element_type=jnp.float32) + b2_ref[...]
    h = jnp.maximum(h, 0.0)                                            # ReLU (f32)

    o_ref[...] = jnp.dot(h.astype(cdt), w3_ref[...],
                         preferred_element_type=jnp.float32) + b3_ref[...]


# ---------------------------------------------------------------------------
# One-time parameter preparation (transpose + per-layer pad).
# ---------------------------------------------------------------------------
def prepare_params(params, weight_dtype=jnp.bfloat16):
    """PyTorch-layout params -> per-layer padded, pre-transposed kernel buffers."""
    w1, b1, w2, b2, w3, b3 = params
    H, S = w1.shape          # fc1: (hidden, seq)
    O = w3.shape[0]          # fc3: (out, hidden)
    Hp = _round_up(H, LANE)
    Op = _round_up(O, LANE)

    w1p = jnp.zeros((S, Hp), weight_dtype).at[:, :H].set(w1.T.astype(weight_dtype))
    w2p = jnp.zeros((Hp, Hp), weight_dtype).at[:H, :H].set(w2.T.astype(weight_dtype))
    w3p = jnp.zeros((Hp, Op), weight_dtype).at[:H, :O].set(w3.T.astype(weight_dtype))

    b1p = jnp.zeros((1, Hp), jnp.float32).at[0, :H].set(b1.astype(jnp.float32))
    b2p = jnp.zeros((1, Hp), jnp.float32).at[0, :H].set(b2.astype(jnp.float32))
    b3p = jnp.zeros((1, Op), jnp.float32).at[0, :O].set(b3.astype(jnp.float32))

    return (w1p, w2p, w3p, b1p, b2p, b3p), (S, H, O, Hp, Op)


# ---------------------------------------------------------------------------
# Jitted forward: (pad batch) -> pallas_call over batch tiles -> slice.
# ---------------------------------------------------------------------------
@partial(jax.jit, static_argnames=("out_size", "tile_b"))
def _forward_impl(x_flat, w1p, w2p, w3p, b1p, b2p, b3p, *, out_size, tile_b):
    B, S = x_flat.shape
    Hp = w1p.shape[1]
    Op = w3p.shape[1]
    B_pad = _round_up(B, tile_b)

    x_pad = x_flat if B_pad == B else (
        jnp.zeros((B_pad, S), jnp.float32).at[:B].set(x_flat))

    # Explicit scoped-VMEM budget: double-buffered weights/biases + x/out tiles
    # + live f32 intermediates, with 2x headroom; capped at 48 MiB (v7x physical
    # VMEM is only 64 MiB; v5e/v6e have 128 MiB).
    wbytes = jnp.dtype(w1p.dtype).itemsize
    est = (2 * wbytes * (S * Hp + Hp * Hp + Hp * Op)   # resident weights (x2 bufs)
           + 2 * 4 * (2 * Hp + Op)                     # biases
           + 2 * 4 * tile_b * (S + Op)                 # x / out tiles (x2 bufs)
           + 4 * 4 * tile_b * Hp)                      # f32 intermediates
    vmem_limit = int(min(max(2 * est, 32 * 1024 * 1024), 48 * 1024 * 1024))

    out_pad = pl.pallas_call(
        ffnn_kernel,
        out_shape=jax.ShapeDtypeStruct((B_pad, Op), jnp.float32),
        grid=(B_pad // tile_b,),
        in_specs=[
            pl.BlockSpec((tile_b, S), lambda i: (i, 0)),   # x row tile (full S lanes)
            pl.BlockSpec((S, Hp), lambda i: (0, 0)),       # W1^T  (resident)
            pl.BlockSpec((Hp, Hp), lambda i: (0, 0)),      # W2^T  (resident)
            pl.BlockSpec((Hp, Op), lambda i: (0, 0)),      # W3^T  (resident)
            pl.BlockSpec((1, Hp), lambda i: (0, 0)),       # b1    (resident)
            pl.BlockSpec((1, Hp), lambda i: (0, 0)),       # b2    (resident)
            pl.BlockSpec((1, Op), lambda i: (0, 0)),       # b3    (resident)
        ],
        out_specs=pl.BlockSpec((tile_b, Op), lambda i: (i, 0)),
        compiler_params=pltpu.CompilerParams(
            dimension_semantics=("parallel",),
            vmem_limit_bytes=vmem_limit),
    )(x_pad, w1p, w2p, w3p, b1p, b2p, b3p)

    return out_pad[:B, :out_size]


def ffnn_uni_forward_batch(xb, prepared):
    """xb: (B, sequence_length, 1) -> (B, output_size)."""
    bufs, (S, H, O, Hp, Op) = prepared
    B = xb.shape[0]
    x_flat = xb.reshape(B, S).astype(jnp.float32)
    tile_b = _choose_tile_b(B)
    return _forward_impl(x_flat, *bufs, out_size=O, tile_b=tile_b)


def ffnn_uni_forward(x, prepared):
    """Single sample (sequence_length, 1) -> (output_size,), matching the
    PyTorch module's forward (x.view(-1) -> fc1 -> ReLU -> fc2 -> ReLU -> fc3)."""
    return ffnn_uni_forward_batch(x[None], prepared)[0]


# ---------------------------------------------------------------------------
# Init + pure-JAX reference (PyTorch semantics).
# ---------------------------------------------------------------------------
def init_params(key, sequence_length, hidden_size, output_size=1):
    """nn.Linear-style init: U(-1/sqrt(fan_in), 1/sqrt(fan_in))."""
    ks = jax.random.split(key, 6)

    def lin(kw, kb, fan_in, fan_out):
        bound = 1.0 / jnp.sqrt(fan_in)
        w = jax.random.uniform(kw, (fan_out, fan_in), jnp.float32, -bound, bound)
        b = jax.random.uniform(kb, (fan_out,), jnp.float32, -bound, bound)
        return w, b

    w1, b1 = lin(ks[0], ks[1], sequence_length, hidden_size)
    w2, b2 = lin(ks[2], ks[3], hidden_size, hidden_size)
    w3, b3 = lin(ks[4], ks[5], hidden_size, output_size)
    return (w1, b1, w2, b2, w3, b3)


def reference_forward(x, params):
    w1, b1, w2, b2, w3, b3 = params
    v = x.reshape(-1)
    h = jnp.maximum(v @ w1.T + b1, 0.0)
    h = jnp.maximum(h @ w2.T + b2, 0.0)
    return h @ w3.T + b3


if __name__ == "__main__":
    sequence_length = 8
    hidden_size = 32
    output_size = 1

    key = jax.random.PRNGKey(0)
    k_param, k_x, k_xb = jax.random.split(key, 3)

    params = init_params(k_param, sequence_length, hidden_size, output_size)
    prepared_fast = prepare_params(params, weight_dtype=jnp.bfloat16)   # perf mode
    prepared_exact = prepare_params(params, weight_dtype=jnp.float32)   # exact mode

    # --- single sample: exact PyTorch-module semantics ----------------------
    x = jax.random.normal(k_x, (sequence_length, 1), dtype=jnp.float32)
    ref = reference_forward(x, params)

    out = jax.block_until_ready(ffnn_uni_forward(x, prepared_exact))
    assert out.shape == (output_size,), out.shape
    assert jnp.allclose(out, ref, atol=1e-5, rtol=1e-5), (out, ref)

    out_fast = jax.block_until_ready(ffnn_uni_forward(x, prepared_fast))
    assert jnp.allclose(out_fast, ref, atol=5e-2, rtol=5e-2), (out_fast, ref)

    # --- batched: exercises padded batch rows and a multi-step grid ---------
    B = 640   # tile_b = 512 -> B_pad = 1024 -> 2 grid steps (v7x megacore split)
    xb = jax.random.normal(k_xb, (B, sequence_length, 1), dtype=jnp.float32)
    ref_b = jax.vmap(lambda s: reference_forward(s, params))(xb)

    out_b = jax.block_until_ready(ffnn_uni_forward_batch(xb, prepared_exact))
    assert out_b.shape == (B, output_size), out_b.shape
    assert jnp.allclose(out_b, ref_b, atol=1e-4, rtol=1e-4)

    out_bf = jax.block_until_ready(ffnn_uni_forward_batch(xb, prepared_fast))
    assert jnp.allclose(out_bf, ref_b, atol=5e-2, rtol=5e-2)

    print("KERNEL_OK")
</pallas_src>

<mosaic_0001>
module attributes {stable_mosaic.version = 11 : i64} {
  func.func @ffnn_kernel(%arg0: i32, %arg1: memref<8x8xf32, #tpu.memory_space<vmem>>, %arg2: memref<8x128xf32, #tpu.memory_space<vmem>>, %arg3: memref<128x128xf32, #tpu.memory_space<vmem>>, %arg4: memref<128x128xf32, #tpu.memory_space<vmem>>, %arg5: memref<1x128xf32, #tpu.memory_space<vmem>>, %arg6: memref<1x128xf32, #tpu.memory_space<vmem>>, %arg7: memref<1x128xf32, #tpu.memory_space<vmem>>, %arg8: memref<8x128xf32, #tpu.memory_space<vmem>>) attributes {dimension_semantics = [#tpu.dimension_semantics<parallel>], iteration_bounds = array<i64: 1>, scalar_prefetch = 0 : i64, scratch_operands = 0 : i64, tpu.core_type = #tpu.core_type<tc>, window_params = [{transform_indices = @transform_0, window_bounds = array<i64: 8, 8>}, {pipeline_mode = #tpu.pipeline_mode<synchronous>, transform_indices = @transform_1, window_bounds = array<i64: 8, 128>}, {pipeline_mode = #tpu.pipeline_mode<synchronous>, transform_indices = @transform_2, window_bounds = array<i64: 128, 128>}, {pipeline_mode = #tpu.pipeline_mode<synchronous>, transform_indices = @transform_3, window_bounds = array<i64: 128, 128>}, {pipeline_mode = #tpu.pipeline_mode<synchronous>, transform_indices = @transform_4, window_bounds = array<i64: 1, 128>}, {pipeline_mode = #tpu.pipeline_mode<synchronous>, transform_indices = @transform_5, window_bounds = array<i64: 1, 128>}, {pipeline_mode = #tpu.pipeline_mode<synchronous>, transform_indices = @transform_6, window_bounds = array<i64: 1, 128>}, {transform_indices = @transform_7, window_bounds = array<i64: 8, 128>}]} {
    %c0 = arith.constant 0 : index
    %c0_0 = arith.constant 0 : index
    %0 = vector.load %arg1[%c0, %c0_0] : memref<8x8xf32, #tpu.memory_space<vmem>>, vector<8x8xf32>
    %c0_1 = arith.constant 0 : index
    %c0_2 = arith.constant 0 : index
    %1 = vector.load %arg2[%c0_1, %c0_2] : memref<8x128xf32, #tpu.memory_space<vmem>>, vector<8x128xf32>
    %cst = arith.constant dense<0.000000e+00> : vector<8x128xf32>
    %2 = tpu.matmul %0, %1, %cst {dimension_numbers = #tpu.dot_dimension_numbers<[1], [0], [0], [1], [0, 0, 1, 1], [], []>} : vector<8x8xf32>, vector<8x128xf32>, vector<8x128xf32> -> vector<8x128xf32>
    %c0_3 = arith.constant 0 : index
    %c0_4 = arith.constant 0 : index
    %3 = vector.load %arg5[%c0_3, %c0_4] : memref<1x128xf32, #tpu.memory_space<vmem>>, vector<1x128xf32>
    %4 = vector.broadcast %3 : vector<1x128xf32> to vector<8x128xf32>
    %5 = arith.addf %2, %4 : vector<8x128xf32>
    %cst_5 = arith.constant 0.000000e+00 : f32
    %6 = vector.broadcast %cst_5 : f32 to vector<8x128xf32>
    %7 = arith.maximumf %5, %6 : vector<8x128xf32>
    %c0_6 = arith.constant 0 : index
    %c0_7 = arith.constant 0 : index
    %8 = vector.load %arg3[%c0_6, %c0_7] : memref<128x128xf32, #tpu.memory_space<vmem>>, vector<128x128xf32>
    %cst_8 = arith.constant dense<0.000000e+00> : vector<8x128xf32>
    %9 = tpu.matmul %7, %8, %cst_8 {dimension_numbers = #tpu.dot_dimension_numbers<[1], [0], [0], [1], [0, 0, 1, 1], [], []>} : vector<8x128xf32>, vector<128x128xf32>, vector<8x128xf32> -> vector<8x128xf32>
    %c0_9 = arith.constant 0 : index
    %c0_10 = arith.constant 0 : index
    %10 = vector.load %arg6[%c0_9, %c0_10] : memref<1x128xf32, #tpu.memory_space<vmem>>, vector<1x128xf32>
    %11 = vector.broadcast %10 : vector<1x128xf32> to vector<8x128xf32>
    %12 = arith.addf %9, %11 : vector<8x128xf32>
    %cst_11 = arith.constant 0.000000e+00 : f32
    %13 = vector.broadcast %cst_11 : f32 to vector<8x128xf32>
    %14 = arith.maximumf %12, %13 : vector<8x128xf32>
    %c0_12 = arith.constant 0 : index
    %c0_13 = arith.constant 0 : index
    %15 = vector.load %arg4[%c0_12, %c0_13] : memref<128x128xf32, #tpu.memory_space<vmem>>, vector<128x128xf32>
    %cst_14 = arith.constant dense<0.000000e+00> : vector<8x128xf32>
    %16 = tpu.matmul %14, %15, %cst_14 {dimension_numbers = #tpu.dot_dimension_numbers<[1], [0], [0], [1], [0, 0, 1, 1], [], []>} : vector<8x128xf32>, vector<128x128xf32>, vector<8x128xf32> -> vector<8x128xf32>
    %c0_15 = arith.constant 0 : index
    %c0_16 = arith.constant 0 : index
    %17 = vector.load %arg7[%c0_15, %c0_16] : memref<1x128xf32, #tpu.memory_space<vmem>>, vector<1x128xf32>
    %18 = vector.broadcast %17 : vector<1x128xf32> to vector<8x128xf32>
    %19 = arith.addf %16, %18 : vector<8x128xf32>
    %c0_17 = arith.constant 0 : index
    %c0_18 = arith.constant 0 : index
    %20 = vector.load %arg8[%c0_17, %c0_18] : memref<8x128xf32, #tpu.memory_space<vmem>>, vector<8x128xf32>
    tpu.vector_store %arg8[%c0_17, %c0_18], %19 {strides = array<i32>} : memref<8x128xf32, #tpu.memory_space<vmem>>, vector<8x128xf32>,
    return
  }
  func.func @transform_0(%arg0: i32) -> (i32, i32) {
    %c0_i32 = arith.constant 0 : i32
    %c0_i32_0 = arith.constant 0 : i32
    return %arg0, %c0_i32 : i32, i32
  }
  func.func @transform_1(%arg0: i32) -> (i32, i32) {
    %c0_i32 = arith.constant 0 : i32
    %c0_i32_0 = arith.constant 0 : i32
    %c0_i32_1 = arith.constant 0 : i32
    return %c0_i32, %c0_i32_0 : i32, i32
  }
  func.func @transform_2(%arg0: i32) -> (i32, i32) {
    %c0_i32 = arith.constant 0 : i32
    %c0_i32_0 = arith.constant 0 : i32
    %c0_i32_1 = arith.constant 0 : i32
    return %c0_i32, %c0_i32_0 : i32, i32
  }
  func.func @transform_3(%arg0: i32) -> (i32, i32) {
    %c0_i32 = arith.constant 0 : i32
    %c0_i32_0 = arith.constant 0 : i32
    %c0_i32_1 = arith.constant 0 : i32
    return %c0_i32, %c0_i32_0 : i32, i32
  }
  func.func @transform_4(%arg0: i32) -> (i32, i32) {
    %c0_i32 = arith.constant 0 : i32
    %c0_i32_0 = arith.constant 0 : i32
    %c0_i32_1 = arith.constant 0 : i32
    return %c0_i32, %c0_i32_0 : i32, i32
  }
  func.func @transform_5(%arg0: i32) -> (i32, i32) {
    %c0_i32 = arith.constant 0 : i32
    %c0_i32_0 = arith.constant 0 : i32
    %c0_i32_1 = arith.constant 0 : i32
    return %c0_i32, %c0_i32_0 : i32, i32
  }
  func.func @transform_6(%arg0: i32) -> (i32, i32) {
    %c0_i32 = arith.constant 0 : i32
    %c0_i32_0 = arith.constant 0 : i32
    %c0_i32_1 = arith.constant 0 : i32
    return %c0_i32, %c0_i32_0 : i32, i32
  }
  func.func @transform_7(%arg0: i32) -> (i32, i32) {
    %c0_i32 = arith.constant 0 : i32
    %c0_i32_0 = arith.constant 0 : i32
    return %arg0, %c0_i32 : i32, i32
  }
}

</mosaic_0001>

<bundles_post_ra>
// kernel: _forward_impl.1
= control target key start
LH: loop header
LB: loop body
LE: loop exit
PB: predicated region body
PF: predicated region fallthrough
CT: control target
= control target key end

     0   :  { %12 = vsyncpa [#allocation3], 0  ;;  %s305_s0 = inlined_call_operand.vmem [shape: f32[8,8], index: 0, kind: input, shape index: {}]   ;;  %s306_s1 = inlined_call_operand.vmem [shape: f32[8,128], index: 1, kind: input, shape index: {}]   ;;  %s307_s2 = inlined_call_operand.hbm [shape: f32[128,128], index: 2, kind: input, shape index: {}]   ;;  %s308_s3 = inlined_call_operand.hbm [shape: f32[128,128], index: 3, kind: input, shape index: {}]   ;;  %s309_s4 = inlined_call_operand.vmem [shape: f32[1,128], index: 4, kind: input, shape index: {}]   ;;  %s310_s5 = inlined_call_operand.vmem [shape: f32[1,128], index: 5, kind: input, shape index: {}]   ;;  %s311_s6 = inlined_call_operand.vmem [shape: f32[1,128], index: 6, kind: input, shape index: {}]   ;;  %s312_s7 = inlined_call_operand.vmem [shape: f32[8,128], index: 7, kind: output, shape index: {}]  }
   0x1   :  { %s22_s26 = sshll.u32 %s307_s2, 4  ;;  %s23_s26 = int_to_ptr.hbm [resolvable:$true] %s22_s26 }
   0x2   :  { %13 = vsyncpa [#allocation5], 0  ;;  %s237_s27 = smov [#allocation2]   ;;  %s35_s8 = sshll.u32 %s308_s3, 4  ;;  %s36_s8 = int_to_ptr.hbm [resolvable:$true] %s35_s8 }
   0x3   :  { %s24_s28 = sshll.u32 %s237_s27, 4  ;;  %s238_s9 = smov 128   ;;  %s25_s28 = int_to_ptr.vmem [resolvable:$true] %s24_s28 }
   0x4   :  { %s239_s10 = smov 8   ;;  %s240_s11 = smov [#allocation4]  }
   0x5   :  { %30 = dma.hbm_to_vmem [thread:$0]  %s23_s26, 2048, %s25_s28, [#allocation3], %s238_s9, %s238_s9, %s239_s10  }
   0x6   :  { %s37_s12 = sshll.u32 %s240_s11, 4  ;;  %s38_s12 = int_to_ptr.vmem [resolvable:$true] %s37_s12 }
   0x7   :  { %43 = dma.hbm_to_vmem [thread:$0]  %s36_s8, 2048, %s38_s12, [#allocation5], %s238_s9, %s238_s9, %s239_s10  }
   0x8   :  { %233 = dma.done.wait [#allocation3], 2048  }
   0x9   :  { %234 = vsyncadd [#allocation3], 4294965248 }
   0xa   :  { %235 = dma.done.wait [#allocation5], 2048  }
   0xb   :  { %236 = vsyncadd [#allocation5], 4294965248  ;;  %vm64_vm0 = vcmask 64512   ;;  %v59_v0 = vld [vmem:[%s306_s1] sm:$0xff]  ;;  %v104_v2 = vld [vmem:[#allocation2 + $0x78] sm:$0xff] }
   0xc   :  { %v58_v1 = vld [vmem:[%s305_s0] sm:$0xff]  ;;  %83 = vmatpush.msra.mxu0 %v59_v0  ;;  %109 = vmatpush.msra.mxu1 %v104_v2  ;;  %v103_v3 = vld [vmem:[#allocation2 + $0x70] sm:$0xff]  ;;  %v102_v4 = vld [vmem:[#allocation2 + $0x68] sm:$0xff] }
   0xd   :  { %177 = vmatmul.msk.f32.vlgmr.msra.gmra.mxu0 %vm64_vm0, %v58_v1  ;;  %v101_v5 = vld [vmem:[#allocation2 + $0x60] sm:$0xff]  ;;  %v100_v6 = vld [vmem:[#allocation2 + $0x58] sm:$0xff]  ;;  %v99_v7 = vld [vmem:[#allocation2 + $0x50] sm:$0xff] }
   0xe   :  { %110 = vmatpush.msra.mxu1 %v103_v3  ;;  %v98_v8 = vld [vmem:[#allocation2 + $0x48] sm:$0xff]  ;;  %v97_v9 = vld [vmem:[#allocation2 + $0x40] sm:$0xff]  ;;  %v96_v10 = vld [vmem:[#allocation2 + $0x38] sm:$0xff] }
   0xf   :  { %v95_v11 = vld [vmem:[#allocation2 + $0x30] sm:$0xff]  ;;  %v94_v12 = vld [vmem:[#allocation2 + $0x28] sm:$0xff]  ;;  %v93_v13 = vld [vmem:[#allocation2 + $0x20] sm:$0xff] }
  0x10   :  { %111 = vmatpush.msra.mxu1 %v102_v4  ;;  %v92_v14 = vld [vmem:[#allocation2 + $0x18] sm:$0xff]  ;;  %v91_v15 = vld [vmem:[#allocation2 + $0x10] sm:$0xff]  ;;  %v90_v16 = vld [vmem:[#allocation2 + $0x8] sm:$0xff] }
  0x11   :  { %v89_v17 = vld [vmem:[#allocation2] sm:$0xff]  ;;  %v145_v18 = vld [vmem:[#allocation4 + $0x78] sm:$0xff]  ;;  %v144_v19 = vld [vmem:[#allocation4 + $0x70] sm:$0xff] }
  0x12   :  { %112 = vmatpush.msra.mxu1 %v101_v5  ;;  %150 = vmatpush.msra.mxu2 %v145_v18  ;;  %v143_v20 = vld [vmem:[#allocation4 + $0x68] sm:$0xff]  ;;  %v142_v21 = vld [vmem:[#allocation4 + $0x60] sm:$0xff]  ;;  %v141_v22 = vld [vmem:[#allocation4 + $0x58] sm:$0xff] }
  0x13   :  { %v140_v23 = vld [vmem:[#allocation4 + $0x50] sm:$0xff]  ;;  %v139_v24 = vld [vmem:[#allocation4 + $0x48] sm:$0xff]  ;;  %v138_v25 = vld [vmem:[#allocation4 + $0x40] sm:$0xff] }
  0x14   :  { %113 = vmatpush.msra.mxu1 %v100_v6  ;;  %151 = vmatpush.msra.mxu2 %v144_v19  ;;  %v137_v26 = vld [vmem:[#allocation4 + $0x38] sm:$0xff]  ;;  %v136_v27 = vld [vmem:[#allocation4 + $0x30] sm:$0xff]  ;;  %v135_v28 = vld [vmem:[#allocation4 + $0x28] sm:$0xff] }
  0x15   :  { %v134_v29 = vld [vmem:[#allocation4 + $0x20] sm:$0xff]  ;;  %v133_v30 = vld [vmem:[#allocation4 + $0x18] sm:$0xff]  ;;  %v132_v35 = vld [vmem:[#allocation4 + $0x10] sm:$0xff] }
  0x16   :  { %114 = vmatpush.msra.mxu1 %v99_v7  ;;  %152 = vmatpush.msra.mxu2 %v143_v20  ;;  %v182_v31 = vld [vmem:[%s309_s4] ss:$0 sm:$0xff]  ;;  %v131_v36 = vld [vmem:[#allocation4 + $0x8] sm:$0xff] }
  0x17   :  { %v130_v37 = vld [vmem:[#allocation4] sm:$0xff] }
  0x18   :  { %115 = vmatpush.msra.mxu1 %v98_v8  ;;  %153 = vmatpush.msra.mxu2 %v142_v21  ;;  %v183_v38 = vld [vmem:[%s310_s5] ss:$0 sm:$0xff] }
  0x19   :  { %v184_v42 = vld [vmem:[%s311_s6] ss:$0 sm:$0xff] }
  0x1a   :  { %116 = vmatpush.msra.mxu1 %v97_v9  ;;  %154 = vmatpush.msra.mxu2 %v141_v22 }
  0x1c   :  { %117 = vmatpush.msra.mxu1 %v96_v10  ;;  %155 = vmatpush.msra.mxu2 %v140_v23 }
  0x1e   :  { %118 = vmatpush.msra.mxu1 %v95_v11  ;;  %156 = vmatpush.msra.mxu2 %v139_v24 }
  0x20   :  { %119 = vmatpush.msra.mxu1 %v94_v12  ;;  %157 = vmatpush.msra.mxu2 %v138_v25 }
  0x22   :  { %120 = vmatpush.msra.mxu1 %v93_v13  ;;  %158 = vmatpush.msra.mxu2 %v137_v26 }
  0x24   :  { %121 = vmatpush.msra.mxu1 %v92_v14  ;;  %159 = vmatpush.msra.mxu2 %v136_v27 }
  0x26   :  { %122 = vmatpush.msra.mxu1 %v91_v15  ;;  %160 = vmatpush.msra.mxu2 %v135_v28 }
  0x28   :  { %123 = vmatpush.msra.mxu1 %v90_v16  ;;  %161 = vmatpush.msra.mxu2 %v134_v29 }
  0x2a   :  { %124 = vmatpush.msra.mxu1 %v89_v17  ;;  %162 = vmatpush.msra.mxu2 %v133_v30 }
  0x2c   :  { %163 = vmatpush.msra.mxu2 %v132_v35 }
  0x2e   :  { %164 = vmatpush.msra.mxu2 %v131_v36 }
  0x30   :  { %165 = vmatpush.msra.mxu2 %v130_v37 }
  0x8a   :  { %v85_v32 = vpop.f32.mrf.mxu0 }
  0x8b   :  { %v86_v33 = vadd.f32 %v182_v31, %v85_v32 }
  0x8d   :  { %v88_v34 = vmax.f32 %v86_v33, 0.0 }
  0x8f   :  { %125 = vmatmul.f32.vlgmr.msra.gmra.mxu1 %v88_v34 }
 0x10c   :  { %v126_v39 = vpop.f32.mrf.mxu1 }
 0x10d   :  { %v127_v40 = vadd.f32 %v183_v38, %v126_v39 }
 0x10f   :  { %v129_v41 = vmax.f32 %v127_v40, 0.0 }
 0x111   :  { %166 = vmatmul.f32.vlgmr.msra.gmra.mxu2 %v129_v41 }
 0x194   :  { %v167_v43 = vpop.f32.mrf.mxu2 }
 0x195   :  { %v168_v44 = vadd.f32 %v184_v42, %v167_v43 }
 0x197   :  { %170 = vst [vmem:[%s312_s7] sm:$0xff] %v168_v44 }
 0x198   :  { %175 = vsyncpa [#allocation3], 1 }
 0x199   :  { %176 = vsyncpa [#allocation5], 1 }

</bundles_post_ra>
